<compile_context>
chip_gen: v7x
topology: tpu7x:2x2x1
jax: 0.10.0
libtpu: 0.0.40
codegen_flags: <defaults>
</compile_context>

<pallas_src>
from functools import partial

import numpy as np
import jax
import jax.numpy as jnp
from jax import lax
from jax.experimental import pallas as pl
from jax.experimental.pallas import tpu as pltpu

ALPHA = 0.5
SPECTRAL_RADIUS = 0.9

INPUT_SIZE = 2
RESERVOIR_SIZE = 100
OUTPUT_SIZE = 1

# lane-friendly padded dims (128-aligned keeps every matmul a plain MXU tile)
I_PAD = 128
R_PAD = 128
O_PAD = 128


def _esn_kernel(x_ref, w_ref, out_ref, *, seq_len, batch):
    """Fused ESN forward.

    x_ref:   (T*B, I_PAD)  time-major input rows, zero-padded past INPUT_SIZE
    w_ref:   (I_PAD + R_PAD, R_PAD + O_PAD) packed weights:
               [0:I_PAD,        0:R_PAD]        -> W_in        (zero-padded)
               [I_PAD:I_PAD+R_PAD, 0:R_PAD]     -> alpha*W_res (zero-padded)
               [I_PAD:I_PAD+R_PAD, R_PAD:]      -> W_out       (zero-padded)
    out_ref: (B, O_PAD)
    """
    T, B = seq_len, batch

    # Static, tile-aligned slices of the single consolidated weight block.
    w_in = w_ref[0:I_PAD, 0:R_PAD]
    w_res_a = w_ref[I_PAD:I_PAD + R_PAD, 0:R_PAD]          # alpha * W_res
    w_out = w_ref[I_PAD:I_PAD + R_PAD, R_PAD:R_PAD + O_PAD]

    def dot(a, b):
        return jnp.dot(a, b, preferred_element_type=jnp.float32,
                       precision=lax.Precision.DEFAULT)

    # Prologue: hoisted, state-independent input projection for all timesteps
    # in one matmul (rows are time-major, so step t owns rows [t*B, (t+1)*B)).
    u_all = dot(x_ref[...], w_in)                            # (T*B, R_PAD)

    one_m_a = 1.0 - ALPHA

    # Recurrence carried on pre_t = state_{t-1} @ W_res + u_t (pre_0 = u_0,
    # since state_{-1} = 0), with alpha pre-folded into W_res:
    #   pre_{t+1} = (1-a)*(pre_t - u_t) + tanh(pre_t) @ (a*W_res) + u_{t+1}
    #   state_t   = (1-a)*state_{t-1} + a*tanh(pre_t)
    pre = u_all[0:B, :]
    state = jnp.zeros((B, R_PAD), jnp.float32)
    for t in range(T):                                       # static unroll
        th = jnp.tanh(pre)
        state = one_m_a * state + ALPHA * th                 # off-MXU side chain
        if t + 1 < T:
            u_t = u_all[t * B:(t + 1) * B, :]
            u_next = u_all[(t + 1) * B:(t + 2) * B, :]
            carry = one_m_a * (pre - u_t) + u_next           # overlaps the dot
            pre = dot(th, w_res_a) + carry

    out_ref[...] = dot(state, w_out)


def pack_weights(w_in, w_res, w_out, alpha=ALPHA):
    """Pack all weights once, at init time, into a single padded f32 block."""
    I, R = w_in.shape
    O = w_out.shape[1]
    w_all = jnp.zeros((I_PAD + R_PAD, R_PAD + O_PAD), jnp.float32)
    w_all = w_all.at[:I, :R].set(w_in.astype(jnp.float32))
    w_all = w_all.at[I_PAD:I_PAD + R, :R].set(alpha * w_res.astype(jnp.float32))
    w_all = w_all.at[I_PAD:I_PAD + R, R_PAD:R_PAD + O].set(w_out.astype(jnp.float32))
    return w_all


@jax.jit
def esn_forward(x, w_all):
    """x: (B, T, INPUT_SIZE) float32; w_all: packed weights. Returns (B, OUTPUT_SIZE)."""
    B, T, I = x.shape

    # Tiny (2 KB) layout plumbing: time-major rows, input lanes zero-padded.
    x_tb = jnp.transpose(x.astype(jnp.float32), (1, 0, 2))          # (T, B, I)
    x_tb = jnp.zeros((T, B, I_PAD), jnp.float32).at[:, :, :I].set(x_tb)
    x_tb = x_tb.reshape(T * B, I_PAD)

    out_p = pl.pallas_call(
        partial(_esn_kernel, seq_len=T, batch=B),
        out_shape=jax.ShapeDtypeStruct((B, O_PAD), jnp.float32),
        grid_spec=pltpu.PrefetchScalarGridSpec(
            num_scalar_prefetch=0,
            grid=(1,),
            in_specs=[
                pl.BlockSpec((T * B, I_PAD), lambda i: (0, 0)),
                pl.BlockSpec((I_PAD + R_PAD, R_PAD + O_PAD), lambda i: (0, 0)),
            ],
            out_specs=pl.BlockSpec((B, O_PAD), lambda i: (0, 0)),
        ),
        compiler_params=pltpu.CompilerParams(dimension_semantics=("arbitrary",)),
    )(x_tb, w_all)

    return out_p[:, :OUTPUT_SIZE]


def esn_reference(x, w_in, w_res, w_out):
    """Pure-JAX reference matching the PyTorch forward."""
    B, T, _ = x.shape
    state = jnp.zeros((B, w_res.shape[0]), jnp.float32)
    for t in range(T):
        state = (1.0 - ALPHA) * state + ALPHA * jnp.tanh(
            state @ w_res + x[:, t, :] @ w_in
        )
    return state @ w_out


def init_params(key):
    """Deterministic equivalent of CustomESN.__init__/reset_parameters."""
    k_res, k_in, k_out = jax.random.split(key, 3)
    w_res = jax.random.uniform(
        k_res, (RESERVOIR_SIZE, RESERVOIR_SIZE), jnp.float32, -1.0, 1.0
    )
    w_in = jax.random.uniform(
        k_in, (INPUT_SIZE, RESERVOIR_SIZE), jnp.float32, -1.0, 1.0
    )
    w_out = jax.random.uniform(
        k_out, (RESERVOIR_SIZE, OUTPUT_SIZE), jnp.float32, -1.0, 1.0
    )
    # Spectral-radius rescale (host-side eig, same as torch.linalg.eigvals path).
    eigvals = np.linalg.eigvals(np.asarray(w_res, dtype=np.float64))
    radius = float(np.max(np.abs(eigvals)))
    w_res = w_res / (radius / SPECTRAL_RADIUS)
    return w_in, w_res, w_out


if __name__ == "__main__":
    key = jax.random.PRNGKey(0)
    k_params, k_x = jax.random.split(key)

    w_in, w_res, w_out = init_params(k_params)
    w_all = pack_weights(w_in, w_res, w_out)   # packed once, reused per call

    # small shapes: batch=8, seq=8, input_size=2 (module defaults otherwise)
    B, T = 8, 8
    x = jax.random.uniform(k_x, (B, T, INPUT_SIZE), jnp.float32, -1.0, 1.0)

    out = jax.block_until_ready(esn_forward(x, w_all))
    ref = jax.block_until_ready(esn_reference(x, w_in, w_res, w_out))

    assert out.shape == (B, OUTPUT_SIZE)
    # default (single-pass) matmul precision on both sides; tolerance covers
    # the bf16-pass rounding plus the alpha-folding / pre-carry reassociation.
    np.testing.assert_allclose(np.asarray(out), np.asarray(ref), rtol=5e-3, atol=5e-3)

    print("KERNEL_OK")
</pallas_src>

<mosaic_0001>
module attributes {stable_mosaic.version = 11 : i64} {
  func.func @_esn_kernel(%arg0: i32, %arg1: memref<64x128xf32, #tpu.memory_space<vmem>>, %arg2: memref<256x256xf32, #tpu.memory_space<vmem>>, %arg3: memref<8x128xf32, #tpu.memory_space<vmem>>) attributes {dimension_semantics = [#tpu.dimension_semantics<arbitrary>], iteration_bounds = array<i64: 1>, scalar_prefetch = 0 : i64, scratch_operands = 0 : i64, tpu.core_type = #tpu.core_type<tc>, window_params = [{pipeline_mode = #tpu.pipeline_mode<synchronous>, transform_indices = @transform_0, window_bounds = array<i64: 64, 128>}, {pipeline_mode = #tpu.pipeline_mode<synchronous>, transform_indices = @transform_1, window_bounds = array<i64: 256, 256>}, {pipeline_mode = #tpu.pipeline_mode<synchronous>, transform_indices = @transform_2, window_bounds = array<i64: 8, 128>}]} {
    %c0 = arith.constant 0 : index
    %c0_0 = arith.constant 0 : index
    %0 = vector.load %arg2[%c0, %c0_0] : memref<256x256xf32, #tpu.memory_space<vmem>>, vector<128x128xf32>
    %c128 = arith.constant 128 : index
    %c0_1 = arith.constant 0 : index
    %1 = vector.load %arg2[%c128, %c0_1] : memref<256x256xf32, #tpu.memory_space<vmem>>, vector<128x128xf32>
    %c128_2 = arith.constant 128 : index
    %c128_3 = arith.constant 128 : index
    %2 = vector.load %arg2[%c128_2, %c128_3] : memref<256x256xf32, #tpu.memory_space<vmem>>, vector<128x128xf32>
    %c0_4 = arith.constant 0 : index
    %c0_5 = arith.constant 0 : index
    %3 = vector.load %arg1[%c0_4, %c0_5] : memref<64x128xf32, #tpu.memory_space<vmem>>, vector<64x128xf32>
    %cst = arith.constant dense<0.000000e+00> : vector<64x128xf32>
    %4 = tpu.matmul %3, %0, %cst {dimension_numbers = #tpu.dot_dimension_numbers<[1], [0], [0], [1], [0, 0, 1, 1], [], []>} : vector<64x128xf32>, vector<128x128xf32>, vector<64x128xf32> -> vector<64x128xf32>
    %5 = vector.extract_strided_slice %4 {offsets = [0, 0], sizes = [8, 128], strides = [1, 1]} : vector<64x128xf32> to vector<8x128xf32>
    %cst_6 = arith.constant 0.000000e+00 : f32
    %6 = vector.broadcast %cst_6 : f32 to vector<8x128xf32>
    %7 = math.tanh %5 : vector<8x128xf32>
    %cst_7 = arith.constant 5.000000e-01 : f32
    %8 = vector.broadcast %cst_7 : f32 to vector<8x128xf32>
    %9 = arith.mulf %8, %6 : vector<8x128xf32>
    %cst_8 = arith.constant 5.000000e-01 : f32
    %10 = vector.broadcast %cst_8 : f32 to vector<8x128xf32>
    %11 = arith.mulf %10, %7 : vector<8x128xf32>
    %12 = arith.addf %9, %11 : vector<8x128xf32>
    %13 = vector.extract_strided_slice %4 {offsets = [0, 0], sizes = [8, 128], strides = [1, 1]} : vector<64x128xf32> to vector<8x128xf32>
    %14 = vector.extract_strided_slice %4 {offsets = [8, 0], sizes = [8, 128], strides = [1, 1]} : vector<64x128xf32> to vector<8x128xf32>
    %15 = arith.subf %5, %13 : vector<8x128xf32>
    %cst_9 = arith.constant 5.000000e-01 : f32
    %16 = vector.broadcast %cst_9 : f32 to vector<8x128xf32>
    %17 = arith.mulf %16, %15 : vector<8x128xf32>
    %18 = arith.addf %17, %14 : vector<8x128xf32>
    %cst_10 = arith.constant dense<0.000000e+00> : vector<8x128xf32>
    %19 = tpu.matmul %7, %1, %cst_10 {dimension_numbers = #tpu.dot_dimension_numbers<[1], [0], [0], [1], [0, 0, 1, 1], [], []>} : vector<8x128xf32>, vector<128x128xf32>, vector<8x128xf32> -> vector<8x128xf32>
    %20 = arith.addf %19, %18 : vector<8x128xf32>
    %21 = math.tanh %20 : vector<8x128xf32>
    %cst_11 = arith.constant 5.000000e-01 : f32
    %22 = vector.broadcast %cst_11 : f32 to vector<8x128xf32>
    %23 = arith.mulf %22, %12 : vector<8x128xf32>
    %cst_12 = arith.constant 5.000000e-01 : f32
    %24 = vector.broadcast %cst_12 : f32 to vector<8x128xf32>
    %25 = arith.mulf %24, %21 : vector<8x128xf32>
    %26 = arith.addf %23, %25 : vector<8x128xf32>
    %27 = vector.extract_strided_slice %4 {offsets = [8, 0], sizes = [8, 128], strides = [1, 1]} : vector<64x128xf32> to vector<8x128xf32>
    %28 = vector.extract_strided_slice %4 {offsets = [16, 0], sizes = [8, 128], strides = [1, 1]} : vector<64x128xf32> to vector<8x128xf32>
    %29 = arith.subf %20, %27 : vector<8x128xf32>
    %cst_13 = arith.constant 5.000000e-01 : f32
    %30 = vector.broadcast %cst_13 : f32 to vector<8x128xf32>
    %31 = arith.mulf %30, %29 : vector<8x128xf32>
    %32 = arith.addf %31, %28 : vector<8x128xf32>
    %cst_14 = arith.constant dense<0.000000e+00> : vector<8x128xf32>
    %33 = tpu.matmul %21, %1, %cst_14 {dimension_numbers = #tpu.dot_dimension_numbers<[1], [0], [0], [1], [0, 0, 1, 1], [], []>} : vector<8x128xf32>, vector<128x128xf32>, vector<8x128xf32> -> vector<8x128xf32>
    %34 = arith.addf %33, %32 : vector<8x128xf32>
    %35 = math.tanh %34 : vector<8x128xf32>
    %cst_15 = arith.constant 5.000000e-01 : f32
    %36 = vector.broadcast %cst_15 : f32 to vector<8x128xf32>
    %37 = arith.mulf %36, %26 : vector<8x128xf32>
    %cst_16 = arith.constant 5.000000e-01 : f32
    %38 = vector.broadcast %cst_16 : f32 to vector<8x128xf32>
    %39 = arith.mulf %38, %35 : vector<8x128xf32>
    %40 = arith.addf %37, %39 : vector<8x128xf32>
    %41 = vector.extract_strided_slice %4 {offsets = [16, 0], sizes = [8, 128], strides = [1, 1]} : vector<64x128xf32> to vector<8x128xf32>
    %42 = vector.extract_strided_slice %4 {offsets = [24, 0], sizes = [8, 128], strides = [1, 1]} : vector<64x128xf32> to vector<8x128xf32>
    %43 = arith.subf %34, %41 : vector<8x128xf32>
    %cst_17 = arith.constant 5.000000e-01 : f32
    %44 = vector.broadcast %cst_17 : f32 to vector<8x128xf32>
    %45 = arith.mulf %44, %43 : vector<8x128xf32>
    %46 = arith.addf %45, %42 : vector<8x128xf32>
    %cst_18 = arith.constant dense<0.000000e+00> : vector<8x128xf32>
    %47 = tpu.matmul %35, %1, %cst_18 {dimension_numbers = #tpu.dot_dimension_numbers<[1], [0], [0], [1], [0, 0, 1, 1], [], []>} : vector<8x128xf32>, vector<128x128xf32>, vector<8x128xf32> -> vector<8x128xf32>
    %48 = arith.addf %47, %46 : vector<8x128xf32>
    %49 = math.tanh %48 : vector<8x128xf32>
    %cst_19 = arith.constant 5.000000e-01 : f32
    %50 = vector.broadcast %cst_19 : f32 to vector<8x128xf32>
    %51 = arith.mulf %50, %40 : vector<8x128xf32>
    %cst_20 = arith.constant 5.000000e-01 : f32
    %52 = vector.broadcast %cst_20 : f32 to vector<8x128xf32>
    %53 = arith.mulf %52, %49 : vector<8x128xf32>
    %54 = arith.addf %51, %53 : vector<8x128xf32>
    %55 = vector.extract_strided_slice %4 {offsets = [24, 0], sizes = [8, 128], strides = [1, 1]} : vector<64x128xf32> to vector<8x128xf32>
    %56 = vector.extract_strided_slice %4 {offsets = [32, 0], sizes = [8, 128], strides = [1, 1]} : vector<64x128xf32> to vector<8x128xf32>
    %57 = arith.subf %48, %55 : vector<8x128xf32>
    %cst_21 = arith.constant 5.000000e-01 : f32
    %58 = vector.broadcast %cst_21 : f32 to vector<8x128xf32>
    %59 = arith.mulf %58, %57 : vector<8x128xf32>
    %60 = arith.addf %59, %56 : vector<8x128xf32>
    %cst_22 = arith.constant dense<0.000000e+00> : vector<8x128xf32>
    %61 = tpu.matmul %49, %1, %cst_22 {dimension_numbers = #tpu.dot_dimension_numbers<[1], [0], [0], [1], [0, 0, 1, 1], [], []>} : vector<8x128xf32>, vector<128x128xf32>, vector<8x128xf32> -> vector<8x128xf32>
    %62 = arith.addf %61, %60 : vector<8x128xf32>
    %63 = math.tanh %62 : vector<8x128xf32>
    %cst_23 = arith.constant 5.000000e-01 : f32
    %64 = vector.broadcast %cst_23 : f32 to vector<8x128xf32>
    %65 = arith.mulf %64, %54 : vector<8x128xf32>
    %cst_24 = arith.constant 5.000000e-01 : f32
    %66 = vector.broadcast %cst_24 : f32 to vector<8x128xf32>
    %67 = arith.mulf %66, %63 : vector<8x128xf32>
    %68 = arith.addf %65, %67 : vector<8x128xf32>
    %69 = vector.extract_strided_slice %4 {offsets = [32, 0], sizes = [8, 128], strides = [1, 1]} : vector<64x128xf32> to vector<8x128xf32>
    %70 = vector.extract_strided_slice %4 {offsets = [40, 0], sizes = [8, 128], strides = [1, 1]} : vector<64x128xf32> to vector<8x128xf32>
    %71 = arith.subf %62, %69 : vector<8x128xf32>
    %cst_25 = arith.constant 5.000000e-01 : f32
    %72 = vector.broadcast %cst_25 : f32 to vector<8x128xf32>
    %73 = arith.mulf %72, %71 : vector<8x128xf32>
    %74 = arith.addf %73, %70 : vector<8x128xf32>
    %cst_26 = arith.constant dense<0.000000e+00> : vector<8x128xf32>
    %75 = tpu.matmul %63, %1, %cst_26 {dimension_numbers = #tpu.dot_dimension_numbers<[1], [0], [0], [1], [0, 0, 1, 1], [], []>} : vector<8x128xf32>, vector<128x128xf32>, vector<8x128xf32> -> vector<8x128xf32>
    %76 = arith.addf %75, %74 : vector<8x128xf32>
    %77 = math.tanh %76 : vector<8x128xf32>
    %cst_27 = arith.constant 5.000000e-01 : f32
    %78 = vector.broadcast %cst_27 : f32 to vector<8x128xf32>
    %79 = arith.mulf %78, %68 : vector<8x128xf32>
    %cst_28 = arith.constant 5.000000e-01 : f32
    %80 = vector.broadcast %cst_28 : f32 to vector<8x128xf32>
    %81 = arith.mulf %80, %77 : vector<8x128xf32>
    %82 = arith.addf %79, %81 : vector<8x128xf32>
    %83 = vector.extract_strided_slice %4 {offsets = [40, 0], sizes = [8, 128], strides = [1, 1]} : vector<64x128xf32> to vector<8x128xf32>
    %84 = vector.extract_strided_slice %4 {offsets = [48, 0], sizes = [8, 128], strides = [1, 1]} : vector<64x128xf32> to vector<8x128xf32>
    %85 = arith.subf %76, %83 : vector<8x128xf32>
    %cst_29 = arith.constant 5.000000e-01 : f32
    %86 = vector.broadcast %cst_29 : f32 to vector<8x128xf32>
    %87 = arith.mulf %86, %85 : vector<8x128xf32>
    %88 = arith.addf %87, %84 : vector<8x128xf32>
    %cst_30 = arith.constant dense<0.000000e+00> : vector<8x128xf32>
    %89 = tpu.matmul %77, %1, %cst_30 {dimension_numbers = #tpu.dot_dimension_numbers<[1], [0], [0], [1], [0, 0, 1, 1], [], []>} : vector<8x128xf32>, vector<128x128xf32>, vector<8x128xf32> -> vector<8x128xf32>
    %90 = arith.addf %89, %88 : vector<8x128xf32>
    %91 = math.tanh %90 : vector<8x128xf32>
    %cst_31 = arith.constant 5.000000e-01 : f32
    %92 = vector.broadcast %cst_31 : f32 to vector<8x128xf32>
    %93 = arith.mulf %92, %82 : vector<8x128xf32>
    %cst_32 = arith.constant 5.000000e-01 : f32
    %94 = vector.broadcast %cst_32 : f32 to vector<8x128xf32>
    %95 = arith.mulf %94, %91 : vector<8x128xf32>
    %96 = arith.addf %93, %95 : vector<8x128xf32>
    %97 = vector.extract_strided_slice %4 {offsets = [48, 0], sizes = [8, 128], strides = [1, 1]} : vector<64x128xf32> to vector<8x128xf32>
    %98 = vector.extract_strided_slice %4 {offsets = [56, 0], sizes = [8, 128], strides = [1, 1]} : vector<64x128xf32> to vector<8x128xf32>
    %99 = arith.subf %90, %97 : vector<8x128xf32>
    %cst_33 = arith.constant 5.000000e-01 : f32
    %100 = vector.broadcast %cst_33 : f32 to vector<8x128xf32>
    %101 = arith.mulf %100, %99 : vector<8x128xf32>
    %102 = arith.addf %101, %98 : vector<8x128xf32>
    %cst_34 = arith.constant dense<0.000000e+00> : vector<8x128xf32>
    %103 = tpu.matmul %91, %1, %cst_34 {dimension_numbers = #tpu.dot_dimension_numbers<[1], [0], [0], [1], [0, 0, 1, 1], [], []>} : vector<8x128xf32>, vector<128x128xf32>, vector<8x128xf32> -> vector<8x128xf32>
    %104 = arith.addf %103, %102 : vector<8x128xf32>
    %105 = math.tanh %104 : vector<8x128xf32>
    %cst_35 = arith.constant 5.000000e-01 : f32
    %106 = vector.broadcast %cst_35 : f32 to vector<8x128xf32>
    %107 = arith.mulf %106, %96 : vector<8x128xf32>
    %cst_36 = arith.constant 5.000000e-01 : f32
    %108 = vector.broadcast %cst_36 : f32 to vector<8x128xf32>
    %109 = arith.mulf %108, %105 : vector<8x128xf32>
    %110 = arith.addf %107, %109 : vector<8x128xf32>
    %cst_37 = arith.constant dense<0.000000e+00> : vector<8x128xf32>
    %111 = tpu.matmul %110, %2, %cst_37 {dimension_numbers = #tpu.dot_dimension_numbers<[1], [0], [0], [1], [0, 0, 1, 1], [], []>} : vector<8x128xf32>, vector<128x128xf32>, vector<8x128xf32> -> vector<8x128xf32>
    %c0_38 = arith.constant 0 : index
    %c0_39 = arith.constant 0 : index
    %112 = vector.load %arg3[%c0_38, %c0_39] : memref<8x128xf32, #tpu.memory_space<vmem>>, vector<8x128xf32>
    tpu.vector_store %arg3[%c0_38, %c0_39], %111 {strides = array<i32>} : memref<8x128xf32, #tpu.memory_space<vmem>>, vector<8x128xf32>,
    return
  }
  func.func @transform_0(%arg0: i32) -> (i32, i32) {
    %c0_i32 = arith.constant 0 : i32
    %c0_i32_0 = arith.constant 0 : i32
    %c0_i32_1 = arith.constant 0 : i32
    return %c0_i32, %c0_i32_0 : i32, i32
  }
  func.func @transform_1(%arg0: i32) -> (i32, i32) {
    %c0_i32 = arith.constant 0 : i32
    %c0_i32_0 = arith.constant 0 : i32
    %c0_i32_1 = arith.constant 0 : i32
    return %c0_i32, %c0_i32_0 : i32, i32
  }
  func.func @transform_2(%arg0: i32) -> (i32, i32) {
    %c0_i32 = arith.constant 0 : i32
    %c0_i32_0 = arith.constant 0 : i32
    %c0_i32_1 = arith.constant 0 : i32
    return %c0_i32, %c0_i32_0 : i32, i32
  }
}

</mosaic_0001>

<bundles_post_ra>
// kernel: esn_forward.1
= control target key start
LH: loop header
LB: loop body
LE: loop exit
PB: predicated region body
PF: predicated region fallthrough
CT: control target
= control target key end

     0   :  { %7 = vsyncpa [#allocation3], 0  ;;  %s1558_s9 = smov [#allocation2]   ;;  %s1789_s0 = inlined_call_operand.vmem [shape: f32[64,128], index: 0, kind: input, shape index: {}]   ;;  %s1790_s1 = inlined_call_operand.hbm [shape: f32[256,256], index: 1, kind: input, shape index: {}]   ;;  %s1791_s2 = inlined_call_operand.vmem [shape: f32[8,128], index: 2, kind: output, shape index: {}]  }
   0x1   :  { %s15_s10 = sshll.u32 %s1558_s9, 4  ;;  %s1534_s13 = scalar_lea.hbm %s1790_s1, 8192  ;;  %s16_s10 = int_to_ptr.vmem [resolvable:$true] %s15_s10 }
   0x2   :  { %p1535_p0 = scmp.ne.s32.totalorder %s1790_s1, %s1534_s13  ;;  %p1538_p1 = scmp.lt.u32.totalorder %s1534_s13, %s1790_s1 }
   0x4   :  { %p1540_p2 = pnand %p1538_p1, %p1535_p0 }
   0x6   :  { %1543 = shalt.err (!%p1540_p2)
}
   0x7   :  { %s1544_s18 = scalar_lea.vmem %s16_s10, 8192  ;;  %p1549_p4 = scmp.lt.s32.totalorder %s16_s10, %s16_s10 }
   0x8   :  { %p1545_p3 = scmp.ne.s32.totalorder %s16_s10, %s1544_s18  ;;  %p1550_p5 = scmp.lt.s32.totalorder %s1544_s18, %s1544_s18 }
   0xa   :  { %p1551_p6 = por %p1550_p5, %p1549_p4 }
   0xc   :  { %p1552_p7 = pnand %p1551_p6, %p1545_p3 }
   0xe   :  { %1555 = shalt.err (!%p1552_p7)
}
   0xf   :  { %s1559_s19 = smov 256   ;;  %s1560_s20 = smov 16  }
  0x10   :  { %21 = dma.hbm_to_vmem [thread:$0]  %s1790_s1, 8192, %s16_s10, [#allocation3], %s1559_s19, %s1559_s19, %s1560_s20  }
  0x11   :  { %1556 = dma.done.wait [#allocation3], 8192  }
  0x12   :  { %1557 = vsyncadd [#allocation3], 4294959104  ;;  %v1561_v0 = vmov 0.0|0.0   ;;  %v25_v1 = vld [vmem:[#allocation2] sm:$0xff]  ;;  %v26_v2 = vld [vmem:[#allocation2 + $0x10] sm:$0xff]  ;;  %vm1562_vm0 = vmmov 0  }
  0x13   :  { %1320 = vmatprep.subr.bf16.mxu1 %v1561_v0  ;;  %v27_v3 = vld [vmem:[#allocation2 + $0x20] sm:$0xff]  ;;  %v1288_v4 = vpack.c.bf16 %v26_v2, %v25_v1  ;;  %v28_v5 = vld [vmem:[#allocation2 + $0x30] sm:$0xff]  ;;  %v74_v41 = vld [vmem:[%s1789_s0 + $0x8] sm:$0xff]  ;;  %v1563_v51 = vmov 0.0  }
  0x14   :  { %v1292_v6 = vpack.c.bf16 %v28_v5, %v27_v3  ;;  %v29_v7 = vld [vmem:[#allocation2 + $0x40] sm:$0xff]  ;;  %v30_v8 = vld [vmem:[#allocation2 + $0x50] sm:$0xff]  ;;  %1040 = vmatprep.mubr.msk.f32.mxu1 %vm1562_vm0, %v1563_v51  ;;  %v76_v53 = vld [vmem:[%s1789_s0 + $0x18] sm:$0xff] }
  0x15   :  { %1289 = vmatprep.subr.bf16.mxu0 %v1288_v4  ;;  %v1296_v9 = vpack.c.bf16 %v30_v8, %v29_v7  ;;  %v31_v10 = vld [vmem:[#allocation2 + $0x60] sm:$0xff]  ;;  %v32_v11 = vld [vmem:[#allocation2 + $0x70] sm:$0xff]  ;;  %v78_v61 = vld [vmem:[%s1789_s0 + $0x28] sm:$0xff] }
  0x16   :  { %1291 = vmatpush3.bf16.msra.mxu0 %v1288_v4  ;;  %v73_v12 = vld [vmem:[%s1789_s0] sm:$0xff]  ;;  %v42_v14 = vld [vmem:[#allocation2 + $0x110] sm:$0xff]  ;;  %v1300_v18 = vpack.c.bf16 %v32_v11, %v31_v10  ;;  %v80_v2 = vld [vmem:[%s1789_s0 + $0x38] sm:$0xff] }
  0x17   :  { %1293 = vmatprep.subr.bf16.mxu0 %v1292_v6  ;;  %996 = vmatprep.mubr.f32.mxu0 %v73_v12  ;;  %v41_v13 = vld [vmem:[#allocation2 + $0x100] sm:$0xff]  ;;  %v44_v17 = vld [vmem:[#allocation2 + $0x130] sm:$0xff] }
  0x18   :  { %v43_v15 = vld [vmem:[#allocation2 + $0x120] sm:$0xff]  ;;  %v1595_v16 = vpack.c.bf16 %v42_v14, %v41_v13  ;;  %v34_v21 = vld [vmem:[#allocation2 + $0x90] sm:$0xff] }
  0x19   :  { %v33_v19 = vld [vmem:[#allocation2 + $0x80] sm:$0xff]  ;;  %v1598_v20 = vpack.c.bf16 %v44_v17, %v43_v15  ;;  %v46_v23 = vld [vmem:[#allocation2 + $0x150] sm:$0xff] }
  0x1a   :  { %1295 = vmatpush3.bf16.msra.mxu0 %v1292_v6  ;;  %1322 = vmatpush3.bf16.msra.mxu1 %v1595_v16  ;;  %v45_v22 = vld [vmem:[#allocation2 + $0x140] sm:$0xff]  ;;  %v1304_v24 = vpack.c.bf16 %v34_v21, %v33_v19  ;;  %v36_v27 = vld [vmem:[#allocation2 + $0xb0] sm:$0xff] }
  0x1b   :  { %1297 = vmatprep.subr.bf16.mxu0 %v1296_v9  ;;  %1323 = vmatprep.subr.bf16.mxu1 %v1561_v0  ;;  %v35_v25 = vld [vmem:[#allocation2 + $0xa0] sm:$0xff]  ;;  %v1602_v26 = vpack.c.bf16 %v46_v23, %v45_v22  ;;  %v48_v29 = vld [vmem:[#allocation2 + $0x170] sm:$0xff] }
  0x1c   :  { %v47_v28 = vld [vmem:[#allocation2 + $0x160] sm:$0xff]  ;;  %v1308_v30 = vpack.c.bf16 %v36_v27, %v35_v25  ;;  %v38_v33 = vld [vmem:[#allocation2 + $0xd0] sm:$0xff] }
  0x1d   :  { %v37_v31 = vld [vmem:[#allocation2 + $0xc0] sm:$0xff]  ;;  %v1606_v32 = vpack.c.bf16 %v48_v29, %v47_v28  ;;  %v50_v35 = vld [vmem:[#allocation2 + $0x190] sm:$0xff] }
  0x1e   :  { %1299 = vmatpush3.bf16.msra.mxu0 %v1296_v9  ;;  %1325 = vmatpush3.bf16.msra.mxu1 %v1598_v20  ;;  %v49_v34 = vld [vmem:[#allocation2 + $0x180] sm:$0xff]  ;;  %v1312_v36 = vpack.c.bf16 %v38_v33, %v37_v31  ;;  %v40_v39 = vld [vmem:[#allocation2 + $0xf0] sm:$0xff] }
  0x1f   :  { %1301 = vmatprep.subr.bf16.mxu0 %v1300_v18  ;;  %1326 = vmatprep.subr.bf16.mxu1 %v1561_v0  ;;  %v1610_v37 = vpack.c.bf16 %v50_v35, %v49_v34  ;;  %v39_v38 = vld [vmem:[#allocation2 + $0xe0] sm:$0xff]  ;;  %v52_v43 = vld [vmem:[#allocation2 + $0x1b0] sm:$0xff] }
  0x20   :  { %v1316_v40 = vpack.c.bf16 %v40_v39, %v39_v38  ;;  %v51_v42 = vld [vmem:[#allocation2 + $0x1a0] sm:$0xff]  ;;  %v54_v46 = vld [vmem:[#allocation2 + $0x1d0] sm:$0xff] }
  0x21   :  { %v1629_v44 = vpack.c.bf16 %v52_v43, %v51_v42  ;;  %v53_v45 = vld [vmem:[#allocation2 + $0x1c0] sm:$0xff]  ;;  %v56_v49 = vld [vmem:[#allocation2 + $0x1f0] sm:$0xff] }
  0x22   :  { %1303 = vmatpush3.bf16.msra.mxu0 %v1300_v18  ;;  %1328 = vmatpush3.bf16.msra.mxu1 %v1602_v26  ;;  %v1635_v47 = vpack.c.bf16 %v54_v46, %v53_v45  ;;  %v55_v48 = vld [vmem:[#allocation2 + $0x1e0] sm:$0xff]  ;;  %v75_v52 = vld [vmem:[%s1789_s0 + $0x10] sm:$0xff] }
  0x23   :  { %1305 = vmatprep.subr.bf16.mxu0 %v1304_v24  ;;  %1329 = vmatprep.subr.bf16.mxu1 %v1561_v0  ;;  %v1641_v50 = vpack.c.bf16 %v56_v49, %v55_v48  ;;  %v77_v60 = vld [vmem:[%s1789_s0 + $0x20] sm:$0xff]  ;;  %v79_v1 = vld [vmem:[%s1789_s0 + $0x30] sm:$0xff] }
  0x26   :  { %1307 = vmatpush3.bf16.msra.mxu0 %v1304_v24  ;;  %1331 = vmatpush3.bf16.msra.mxu1 %v1606_v32 }
  0x27   :  { %1309 = vmatprep.subr.bf16.mxu0 %v1308_v30  ;;  %1332 = vmatprep.subr.bf16.mxu1 %v1561_v0 }
  0x2a   :  { %1311 = vmatpush3.bf16.msra.mxu0 %v1308_v30  ;;  %1334 = vmatpush3.bf16.msra.mxu1 %v1610_v37 }
  0x2b   :  { %1313 = vmatprep.subr.bf16.mxu0 %v1312_v36  ;;  %1335 = vmatprep.subr.bf16.mxu1 %v1561_v0 }
  0x2e   :  { %1315 = vmatpush3.bf16.msra.mxu0 %v1312_v36  ;;  %1337 = vmatpush3.bf16.msra.mxu1 %v1629_v44 }
  0x2f   :  { %1317 = vmatprep.subr.bf16.mxu0 %v1316_v40  ;;  %1338 = vmatprep.subr.bf16.mxu1 %v1561_v0 }
  0x32   :  { %1319 = vmatpush3.bf16.msra.mxu0 %v1316_v40  ;;  %1340 = vmatpush3.bf16.msra.mxu1 %v1635_v47 }
  0x33   :  { %1344 = vmatprep.subr.bf16.mxu0 %v1561_v0  ;;  %1341 = vmatprep.subr.bf16.mxu1 %v1561_v0 }
  0x35   :  { %997 = vmatmul.mubr.f32.vlgmr.msra.gmra.mrb[0].mxu0 %v74_v41 }
  0x36   :  { %1346 = vmatpush3.bf16.msra.mxu0 %v1595_v16  ;;  %1343 = vmatpush3.bf16.msra.mxu1 %v1641_v50 }
  0x37   :  { %1347 = vmatprep.subr.bf16.mxu0 %v1561_v0  ;;  %1368 = vmatprep.subr.bf16.mxu1 %v1561_v0 }
  0x38   :  { %999 = vmatprep.mubr.f32.mxu0 %v75_v52 }
  0x39   :  { %1000 = vmatmul.mubr.f32.gmra.mrb[2].mxu0 %v76_v53 }
  0x3a   :  { %1349 = vmatpush3.bf16.msra.mxu0 %v1598_v20  ;;  %1002 = vmatprep.mubr.f32.mxu0 %v77_v60  ;;  %v57_v60 = vld [vmem:[#allocation2 + $0x108] sm:$0xff] }
  0x3b   :  { %1350 = vmatprep.subr.bf16.mxu0 %v1561_v0 }
  0x3d   :  { %1003 = vmatmul.mubr.f32.gmra.mrb[4].mxu0 %v78_v61  ;;  %v58_v61 = vld [vmem:[#allocation2 + $0x118] sm:$0xff] }
  0x3e   :  { %1352 = vmatpush3.bf16.msra.mxu0 %v1602_v26  ;;  %1005 = vmatprep.mubr.f32.mxu0 %v79_v1 }
  0x3f   :  { %1353 = vmatprep.subr.bf16.mxu0 %v1561_v0 }
  0x41   :  { %1006 = vmatmul.mubr.f32.gmra.mrb[6].mxu0 %v80_v2  ;;  %v61_v2 = vld [vmem:[#allocation2 + $0x148] sm:$0xff] }
  0x42   :  { %1355 = vmatpush3.bf16.msra.mxu0 %v1606_v32  ;;  %1075 = vmatprep.mubr.msk.f32.mxu0 %vm1562_vm0, %v1563_v51 }
  0x43   :  { %1356 = vmatprep.subr.bf16.mxu0 %v1561_v0 }
  0x46   :  { %1358 = vmatpush3.bf16.msra.mxu0 %v1610_v37 }
  0x47   :  { %1359 = vmatprep.subr.bf16.mxu0 %v1561_v0 }
  0x4a   :  { %1361 = vmatpush3.bf16.msra.mxu0 %v1629_v44 }
  0x4b   :  { %1362 = vmatprep.subr.bf16.mxu0 %v1561_v0 }
  0x4e   :  { %1364 = vmatpush3.bf16.msra.mxu0 %v1635_v47 }
  0x4f   :  { %1365 = vmatprep.subr.bf16.mxu0 %v1561_v0 }
  0x52   :  { %1367 = vmatpush3.bf16.msra.mxu0 %v1641_v50 }
  0x53   :  { %1392 = vmatprep.subr.bf16.mxu0 %v1561_v0 }
 0x108   :  { %v998_v54 = vpop.f32.mrb[0].mxu0 }
 0x109   :  { %v147_v55 = vpop.f32.mrb[1].mxu0 }
 0x10a   :  { %1518 = vtanh.f32 %v147_v55  ;;  %v189_v56 = vsub.f32 %v147_v55, %v147_v55 }
 0x10c   :  { %v190_v57 = vmul.f32 0.5, %v189_v56  ;;  %v1679_v62 = vpop.f32.mrb[2].mxu0 }
 0x10d   :  { %v157_v63 = vpop.f32.mrb[3].mxu0 }
 0x10e   :  { %v191_v58 = vadd.f32 %v998_v54, %v190_v57 }
 0x110   :  { %v1707_v14 = vpop.f32.mrb[4].mxu0 }
 0x111   :  { %v1709_v15 = vpop.f32.mrb[5].mxu0 }
 0x114   :  { %v1519_v59 = vpop.eup %1518  ;;  %v1711_v17 = vpop.f32.mrb[6].mxu0 }
 0x115   :  { %1041 = vmatmul.mubr.f32.vlgmr.msra.gmra.mrb[0].mxu1 %v1519_v59  ;;  %v187_v9 = vmul.f32 0.5, %v1519_v59  ;;  %v1713_v18 = vpop.f32.mrb[7].mxu0 }
 0x116   :  { %1370 = vmatpush3.bf16.msra.mxu1 %v1595_v16  ;;  %1110 = vmatprep.mubr.msk.f32.mxu1 %vm1562_vm0, %v1563_v51 }
 0x117   :  { %1371 = vmatprep.subr.bf16.mxu1 %v1561_v0  ;;  %v263_v11 = vmul.f32 0.5, %v187_v9 }
 0x11a   :  { %1373 = vmatpush3.bf16.msra.mxu1 %v1598_v20 }
 0x11b   :  { %1374 = vmatprep.subr.bf16.mxu1 %v1561_v0 }
 0x11e   :  { %1376 = vmatpush3.bf16.msra.mxu1 %v1602_v26 }
 0x11f   :  { %1377 = vmatprep.subr.bf16.mxu1 %v1561_v0 }
 0x122   :  { %1379 = vmatpush3.bf16.msra.mxu1 %v1606_v32 }
 0x123   :  { %1380 = vmatprep.subr.bf16.mxu1 %v1561_v0 }
 0x126   :  { %1382 = vmatpush3.bf16.msra.mxu1 %v1610_v37 }
 0x127   :  { %1383 = vmatprep.subr.bf16.mxu1 %v1561_v0 }
 0x12a   :  { %1385 = vmatpush3.bf16.msra.mxu1 %v1629_v44 }
 0x12b   :  { %1386 = vmatprep.subr.bf16.mxu1 %v1561_v0 }
 0x12e   :  { %1388 = vmatpush3.bf16.msra.mxu1 %v1635_v47 }
 0x12f   :  { %1389 = vmatprep.subr.bf16.mxu1 %v1561_v0 }
 0x132   :  { %1391 = vmatpush3.bf16.msra.mxu1 %v1641_v50 }
 0x133   :  { %1416 = vmatprep.subr.bf16.mxu1 %v1561_v0 }
 0x1e8   :  { %v258_v3 = vpop.f32.mrb[0].mxu1 }
 0x1e9   :  { %v259_v4 = vadd.f32 %v258_v3, %v191_v58  ;;  %v1042_v5 = vpop.f32.mrb[1].mxu1  ;;  %v62_v3 = vld [vmem:[#allocation2 + $0x158] sm:$0xff] }
 0x1ea   :  { %v63_v5 = vld [vmem:[#allocation2 + $0x168] sm:$0xff] }
 0x1eb   :  { %1520 = vtanh.f32 %v259_v4  ;;  %v266_v6 = vsub.f32 %v259_v4, %v998_v54  ;;  %v1495_v4 = vpack.c.bf16 %v62_v3, %v61_v2 }
 0x1ed   :  { %v267_v7 = vmul.f32 0.5, %v266_v6  ;;  %v64_v6 = vld [vmem:[#allocation2 + $0x178] sm:$0xff] }
 0x1ef   :  { %v268_v8 = vadd.f32 %v267_v7, %v157_v63 }
 0x1f5   :  { %v1521_v10 = vpop.eup %1520 }
 0x1f6   :  { %v264_v12 = vmul.f32 0.5, %v1521_v10  ;;  %1076 = vmatmul.mubr.f32.vlgmr.msra.gmra.mrb[8].mxu0 %v1521_v10 }
 0x1f7   :  { %1394 = vmatpush3.bf16.msra.mxu0 %v1595_v16  ;;  %1145 = vmatprep.mubr.msk.f32.mxu0 %vm1562_vm0, %v1563_v51 }
 0x1f8   :  { %v265_v13 = vadd.f32 %v264_v12, %v263_v11  ;;  %1395 = vmatprep.subr.bf16.mxu0 %v1561_v0 }
 0x1fa   :  { %v340_v28 = vmul.f32 0.5, %v265_v13 }
 0x1fb   :  { %1397 = vmatpush3.bf16.msra.mxu0 %v1598_v20 }
 0x1fc   :  { %1398 = vmatprep.subr.bf16.mxu0 %v1561_v0 }
 0x1ff   :  { %1400 = vmatpush3.bf16.msra.mxu0 %v1602_v26 }
 0x200   :  { %1401 = vmatprep.subr.bf16.mxu0 %v1561_v0 }
 0x203   :  { %1403 = vmatpush3.bf16.msra.mxu0 %v1606_v32 }
 0x204   :  { %1404 = vmatprep.subr.bf16.mxu0 %v1561_v0 }
 0x207   :  { %1406 = vmatpush3.bf16.msra.mxu0 %v1610_v37 }
 0x208   :  { %1407 = vmatprep.subr.bf16.mxu0 %v1561_v0 }
 0x20b   :  { %1409 = vmatpush3.bf16.msra.mxu0 %v1629_v44 }
 0x20c   :  { %1410 = vmatprep.subr.bf16.mxu0 %v1561_v0 }
 0x20f   :  { %1412 = vmatpush3.bf16.msra.mxu0 %v1635_v47 }
 0x210   :  { %1413 = vmatprep.subr.bf16.mxu0 %v1561_v0 }
 0x213   :  { %1415 = vmatpush3.bf16.msra.mxu0 %v1641_v50 }
 0x214   :  { %1440 = vmatprep.subr.bf16.mxu0 %v1561_v0 }
 0x2c9   :  { %v335_v19 = vpop.f32.mrb[8].mxu0 }
 0x2ca   :  { %v336_v21 = vadd.f32 %v335_v19, %v268_v8  ;;  %v1077_v22 = vpop.f32.mrb[9].mxu0 }
 0x2cb   :  { %v66_v22 = vld [vmem:[#allocation2 + $0x198] sm:$0xff] }
 0x2cc   :  { %1522 = vtanh.f32 %v336_v21  ;;  %v343_v23 = vsub.f32 %v336_v21, %v157_v63  ;;  %v60_v63 = vld [vmem:[#allocation2 + $0x138] sm:$0xff]  ;;  %v65_v21 = vld [vmem:[#allocation2 + $0x188] sm:$0xff] }
 0x2ce   :  { %v344_v24 = vmul.f32 0.5, %v343_v23  ;;  %v1501_v23 = vpack.c.bf16 %v66_v22, %v65_v21 }
 0x2d0   :  { %v345_v25 = vadd.f32 %v1679_v62, %v344_v24  ;;  %v67_v24 = vld [vmem:[#allocation2 + $0x1a8] sm:$0xff] }
 0x2d6   :  { %v1523_v27 = vpop.eup %1522 }
 0x2d7   :  { %v341_v29 = vmul.f32 0.5, %v1523_v27  ;;  %1111 = vmatmul.mubr.f32.vlgmr.msra.gmra.mrb[2].mxu1 %v1523_v27 }
 0x2d8   :  { %1418 = vmatpush3.bf16.msra.mxu1 %v1595_v16  ;;  %1180 = vmatprep.mubr.msk.f32.mxu1 %vm1562_vm0, %v1563_v51 }
 0x2d9   :  { %v342_v30 = vadd.f32 %v341_v29, %v340_v28  ;;  %1419 = vmatprep.subr.bf16.mxu1 %v1561_v0  ;;  %v70_v28 = vld [vmem:[#allocation2 + $0x1d8] sm:$0xff]  ;;  %v71_v29 = vld [vmem:[#allocation2 + $0x1e8] sm:$0xff] }
 0x2db   :  { %v417_v40 = vmul.f32 0.5, %v342_v30  ;;  %v72_v30 = vld [vmem:[#allocation2 + $0x1f8] sm:$0xff] }
 0x2dc   :  { %1421 = vmatpush3.bf16.msra.mxu1 %v1598_v20 }
 0x2dd   :  { %1422 = vmatprep.subr.bf16.mxu1 %v1561_v0 }
 0x2e0   :  { %1424 = vmatpush3.bf16.msra.mxu1 %v1602_v26 }
 0x2e1   :  { %1425 = vmatprep.subr.bf16.mxu1 %v1561_v0 }
 0x2e4   :  { %1427 = vmatpush3.bf16.msra.mxu1 %v1606_v32 }
 0x2e5   :  { %1428 = vmatprep.subr.bf16.mxu1 %v1561_v0 }
 0x2e8   :  { %1430 = vmatpush3.bf16.msra.mxu1 %v1610_v37 }
 0x2e9   :  { %1431 = vmatprep.subr.bf16.mxu1 %v1561_v0 }
 0x2ec   :  { %1433 = vmatpush3.bf16.msra.mxu1 %v1629_v44 }
 0x2ed   :  { %1434 = vmatprep.subr.bf16.mxu1 %v1561_v0 }
 0x2f0   :  { %1436 = vmatpush3.bf16.msra.mxu1 %v1635_v47 }
 0x2f1   :  { %1437 = vmatprep.subr.bf16.mxu1 %v1561_v0 }
 0x2f4   :  { %1439 = vmatpush3.bf16.msra.mxu1 %v1641_v50 }
 0x2f5   :  { %1464 = vmatprep.subr.bf16.mxu1 %v1561_v0 }
 0x3aa   :  { %v412_v31 = vpop.f32.mrb[2].mxu1 }
 0x3ab   :  { %v413_v33 = vadd.f32 %v412_v31, %v345_v25  ;;  %v1112_v34 = vpop.f32.mrb[3].mxu1  ;;  %v68_v25 = vld [vmem:[#allocation2 + $0x1b8] sm:$0xff]  ;;  %v1510_v31 = vpack.c.bf16 %v72_v30, %v71_v29 }
 0x3ac   :  { %v1504_v27 = vpack.c.bf16 %v68_v25, %v67_v24 }
 0x3ad   :  { %1524 = vtanh.f32 %v413_v33  ;;  %v420_v35 = vsub.f32 %v413_v33, %v1679_v62  ;;  %v1489_v62 = vpack.c.bf16 %v58_v61, %v57_v60 }
 0x3af   :  { %v421_v36 = vmul.f32 0.5, %v420_v35 }
 0x3b1   :  { %v422_v38 = vadd.f32 %v421_v36, %v1709_v15 }
 0x3b7   :  { %v1525_v39 = vpop.eup %1524 }
 0x3b8   :  { %v418_v41 = vmul.f32 0.5, %v1525_v39  ;;  %1146 = vmatmul.mubr.f32.vlgmr.msra.gmra.mrb[10].mxu0 %v1525_v39 }
 0x3b9   :  { %1442 = vmatpush3.bf16.msra.mxu0 %v1595_v16  ;;  %1215 = vmatprep.mubr.msk.f32.mxu0 %vm1562_vm0, %v1563_v51 }
 0x3ba   :  { %v419_v42 = vadd.f32 %v418_v41, %v417_v40  ;;  %1443 = vmatprep.subr.bf16.mxu0 %v1561_v0 }
 0x3bc   :  { %v494_v55 = vmul.f32 0.5, %v419_v42 }
 0x3bd   :  { %1445 = vmatpush3.bf16.msra.mxu0 %v1598_v20 }
 0x3be   :  { %1446 = vmatprep.subr.bf16.mxu0 %v1561_v0 }
 0x3c1   :  { %1448 = vmatpush3.bf16.msra.mxu0 %v1602_v26 }
 0x3c2   :  { %1449 = vmatprep.subr.bf16.mxu0 %v1561_v0 }
 0x3c5   :  { %1451 = vmatpush3.bf16.msra.mxu0 %v1606_v32 }
 0x3c6   :  { %1452 = vmatprep.subr.bf16.mxu0 %v1561_v0 }
 0x3c9   :  { %1454 = vmatpush3.bf16.msra.mxu0 %v1610_v37 }
 0x3ca   :  { %1455 = vmatprep.subr.bf16.mxu0 %v1561_v0 }
 0x3cd   :  { %1457 = vmatpush3.bf16.msra.mxu0 %v1629_v44 }
 0x3ce   :  { %1458 = vmatprep.subr.bf16.mxu0 %v1561_v0 }
 0x3d1   :  { %1460 = vmatpush3.bf16.msra.mxu0 %v1635_v47 }
 0x3d2   :  { %1461 = vmatprep.subr.bf16.mxu0 %v1561_v0 }
 0x3d5   :  { %1463 = vmatpush3.bf16.msra.mxu0 %v1641_v50 }
 0x3d6   :  { %1488 = vmatprep.subr.bf16.mxu0 %v1561_v0 }
 0x48b   :  { %v489_v43 = vpop.f32.mrb[10].mxu0 }
 0x48c   :  { %v490_v45 = vadd.f32 %v489_v43, %v422_v38  ;;  %v1147_v46 = vpop.f32.mrb[11].mxu0 }
 0x48e   :  { %1526 = vtanh.f32 %v490_v45  ;;  %v497_v48 = vsub.f32 %v490_v45, %v1709_v15 }
 0x490   :  { %v498_v49 = vmul.f32 0.5, %v497_v48 }
 0x492   :  { %v499_v52 = vadd.f32 %v1707_v14, %v498_v49 }
 0x498   :  { %v1527_v53 = vpop.eup %1526 }
 0x499   :  { %v495_v54 = vmul.f32 0.5, %v1527_v53  ;;  %1181 = vmatmul.mubr.f32.vlgmr.msra.gmra.mrb[4].mxu1 %v1527_v53 }
 0x49a   :  { %1466 = vmatpush3.bf16.msra.mxu1 %v1595_v16  ;;  %1250 = vmatprep.mubr.msk.f32.mxu1 %vm1562_vm0, %v1563_v51 }
 0x49b   :  { %1467 = vmatprep.subr.bf16.mxu1 %v1561_v0  ;;  %v496_v56 = vadd.f32 %v495_v54, %v494_v55 }
 0x49e   :  { %1469 = vmatpush3.bf16.msra.mxu1 %v1598_v20 }
 0x49f   :  { %1470 = vmatprep.subr.bf16.mxu1 %v1561_v0 }
 0x4a2   :  { %1472 = vmatpush3.bf16.msra.mxu1 %v1602_v26 }
 0x4a3   :  { %1473 = vmatprep.subr.bf16.mxu1 %v1561_v0 }
 0x4a6   :  { %1475 = vmatpush3.bf16.msra.mxu1 %v1606_v32 }
 0x4a7   :  { %1476 = vmatprep.subr.bf16.mxu1 %v1561_v0 }
 0x4aa   :  { %1478 = vmatpush3.bf16.msra.mxu1 %v1610_v37 }
 0x4ab   :  { %1479 = vmatprep.subr.bf16.mxu1 %v1561_v0 }
 0x4ae   :  { %1481 = vmatpush3.bf16.msra.mxu1 %v1629_v44  ;;  %v571_v44 = vmul.f32 0.5, %v496_v56 }
 0x4af   :  { %1482 = vmatprep.subr.bf16.mxu1 %v1561_v0 }
 0x4b2   :  { %1484 = vmatpush3.bf16.msra.mxu1 %v1635_v47 }
 0x4b3   :  { %1485 = vmatprep.subr.bf16.mxu1 %v1561_v0 }
 0x4b6   :  { %1487 = vmatpush3.bf16.msra.mxu1 %v1641_v50  ;;  %v59_v50 = vld [vmem:[#allocation2 + $0x128] sm:$0xff] }
 0x4b7   :  { %v1492_v1 = vpack.c.bf16 %v60_v63, %v59_v50 }
 0x56c   :  { %v566_v16 = vpop.f32.mrb[4].mxu1 }
 0x56d   :  { %v567_v20 = vadd.f32 %v566_v16, %v499_v52  ;;  %v1182_v26 = vpop.f32.mrb[5].mxu1 }
 0x56f   :  { %1528 = vtanh.f32 %v567_v20  ;;  %v574_v32 = vsub.f32 %v567_v20, %v1707_v14 }
 0x571   :  { %v575_v57 = vmul.f32 0.5, %v574_v32 }
 0x573   :  { %v576_v37 = vadd.f32 %v575_v57, %v1713_v18 }
 0x579   :  { %v1529_v58 = vpop.eup %1528 }
 0x57a   :  { %1216 = vmatmul.mubr.f32.vlgmr.msra.gmra.mrb[12].mxu0 %v1529_v58  ;;  %v572_v59 = vmul.f32 0.5, %v1529_v58 }
 0x57b   :  { %1285 = vmatprep.mubr.msk.f32.mxu0 %vm1562_vm0, %v1563_v51  ;;  %1490 = vmatpush3.bf16.msra.mxu0 %v1489_v62  ;;  %v1498_v51 = vpack.c.bf16 %v64_v6, %v63_v5 }
 0x57c   :  { %v573_v47 = vadd.f32 %v572_v59, %v571_v44  ;;  %1491 = vmatprep.subr.bf16.mxu0 %v1561_v0 }
 0x57e   :  { %v648_v14 = vmul.f32 0.5, %v573_v47 }
 0x57f   :  { %1493 = vmatpush3.bf16.msra.mxu0 %v1492_v1 }
 0x580   :  { %1494 = vmatprep.subr.bf16.mxu0 %v1561_v0 }
 0x583   :  { %1496 = vmatpush3.bf16.msra.mxu0 %v1495_v4 }
 0x584   :  { %1497 = vmatprep.subr.bf16.mxu0 %v1561_v0 }
 0x587   :  { %1499 = vmatpush3.bf16.msra.mxu0 %v1498_v51 }
 0x588   :  { %1500 = vmatprep.subr.bf16.mxu0 %v1561_v0 }
 0x58b   :  { %1502 = vmatpush3.bf16.msra.mxu0 %v1501_v23 }
 0x58c   :  { %1503 = vmatprep.subr.bf16.mxu0 %v1561_v0 }
 0x58f   :  { %1505 = vmatpush3.bf16.msra.mxu0 %v1504_v27 }
 0x590   :  { %1506 = vmatprep.subr.bf16.mxu0 %v1561_v0 }
 0x64d   :  { %v643_v7 = vpop.f32.mrb[12].mxu0 }
 0x64e   :  { %v644_v8 = vadd.f32 %v643_v7, %v576_v37  ;;  %v1217_v9 = vpop.f32.mrb[13].mxu0 }
 0x650   :  { %1530 = vtanh.f32 %v644_v8  ;;  %v651_v10 = vsub.f32 %v644_v8, %v1713_v18  ;;  %v69_v18 = vld [vmem:[#allocation2 + $0x1c8] sm:$0xff] }
 0x652   :  { %v652_v11 = vmul.f32 0.5, %v651_v10 }
 0x654   :  { %v653_v12 = vadd.f32 %v1711_v17, %v652_v11  ;;  %v1507_v17 = vpack.c.bf16 %v70_v28, %v69_v18 }
 0x656   :  { %1508 = vmatpush3.bf16.msra.mxu0 %v1507_v17 }
 0x657   :  { %1509 = vmatprep.subr.bf16.mxu0 %v1561_v0 }
 0x65a   :  { %v1531_v13 = vpop.eup %1530  ;;  %1511 = vmatpush3.bf16.msra.mxu0 %v1510_v31 }
 0x65b   :  { %1251 = vmatmul.mubr.f32.vlgmr.msra.gmra.mrb[6].mxu1 %v1531_v13  ;;  %v649_v15 = vmul.f32 0.5, %v1531_v13 }
 0x65d   :  { %v650_v19 = vadd.f32 %v649_v15, %v648_v14 }
 0x65f   :  { %v725_v38 = vmul.f32 0.5, %v650_v19 }
 0x72e   :  { %v720_v33 = vpop.f32.mrb[6].mxu1 }
 0x72f   :  { %v721_v34 = vadd.f32 %v720_v33, %v653_v12  ;;  %v1252_v35 = vpop.f32.mrb[7].mxu1 }
 0x731   :  { %1532 = vtanh.f32 %v721_v34 }
 0x73b   :  { %v1533_v36 = vpop.eup %1532 }
 0x73c   :  { %v726_v39 = vmul.f32 0.5, %v1533_v36 }
 0x73e   :  { %v727_v40 = vadd.f32 %v726_v39, %v725_v38 }
 0x740   :  { %1286 = vmatmul.mubr.f32.vlgmr.msra.gmra.mrb[14].mxu0 %v727_v40 }
 0x813   :  { %v794_v41 = vpop.f32.mrb[14].mxu0 }
 0x814   :  { %798 = vst [vmem:[%s1791_s2] sm:$0xff] %v794_v41  ;;  %v1287_v42 = vpop.f32.mrb[15].mxu0 }
 0x815   :  { %803 = vsyncpa [#allocation3], 1 }

</bundles_post_ra>
